<compile_context>
chip_gen: v7x
topology: tpu7x:2x2x1
jax: 0.10.0
libtpu: 0.0.40
codegen_flags: <defaults>
</compile_context>

<pallas_src>
import jax
import jax.numpy as jnp
from jax import lax
from jax.experimental import pallas as pl
from jax.experimental.pallas import tpu as pltpu

_HIDDEN = 32
_OUT = 2


def _mlp_kernel(x_ref, w1_ref, b1_ref, w2_ref, b2_ref, o_ref):
    # h^T = relu(W1 @ x^T + b1): contract d_model (last dim of both operands) -> (hidden, bm).
    ht = lax.dot_general(
        w1_ref[...], x_ref[...],
        dimension_numbers=(((1,), (1,)), ((), ())),
        preferred_element_type=jnp.float32)
    ht = jnp.maximum(ht + b1_ref[...], 0.0)           # b1 is (hidden, 1) -> broadcasts over lanes
    # y^T = W2 @ h^T + b2 -> (2, bm), lane-dense store (f32 MXU accumulation throughout).
    ot = jnp.dot(w2_ref[...], ht, preferred_element_type=jnp.float32)
    o_ref[...] = (ot + b2_ref[...]).astype(o_ref.dtype)


def _round_up(x, m):
    return ((x + m - 1) // m) * m


def _vmem_capacity_bytes():
    """Per-core VMEM capacity; conservative 64 MiB (v7x) fallback if the query fails."""
    try:
        cap = int(getattr(pltpu.get_tpu_info(), "vmem_capacity_bytes", 0))
        if cap > 0:
            return cap
    except Exception:
        pass
    return 64 << 20


def _choose_block_m(n, d_model_padded, itemsize, requested, vmem_cap):
    """Row-tile size: large (amortize ~0.35us/step), VMEM-safe, multiple of 128 (lane-dense out)."""
    requested = max(128, _round_up(requested, 128))
    # Two double-buffered x tiles must fit in ~3/8 of VMEM (24 MiB on v7x, 48 MiB on 128 MiB chips).
    x_budget = (3 * vmem_cap) // 8
    cap_vmem = max(128, ((x_budget // (2 * d_model_padded * itemsize)) // 128) * 128)
    # v7x (64 MiB VMEM, 2 TCs): keep >= 4 steps so the "parallel" axis shards evenly across both
    # cores with some pipelining; single-TC v5e/v6e only need >= 2 steps for DMA/compute overlap.
    min_steps = 4 if vmem_cap <= (64 << 20) else 2
    cap_rows = max(128, _round_up(pl.cdiv(n, min_steps), 128))
    return max(128, min(requested, cap_vmem, cap_rows))


def decision_decoder_forward(x, w1, b1, w2, b2, *, block_m=1024):
    """x: [..., d_model]; w1: [32, d_model]; b1: [32]; w2: [2, 32]; b2: [2] (PyTorch layouts)."""
    orig_shape = x.shape
    d_model = orig_shape[-1]
    x2 = x.reshape(-1, d_model)
    n = x2.shape[0]
    itemsize = x2.dtype.itemsize

    hidden = w1.shape[0]
    out_f = w2.shape[0]
    b1_col = b1.reshape(hidden, 1)
    b2_col = b2.reshape(out_f, 1)

    vmem_cap = _vmem_capacity_bytes()
    d_model_p = _round_up(d_model, 128)
    bm = _choose_block_m(n, d_model_p, itemsize, block_m, vmem_cap)
    grid = (pl.cdiv(n, bm),)

    # Explicit VMEM limit: double-buffered x/out tiles + (double-buffered, lane-padded) resident
    # weights/biases + the f32 h^T intermediate + headroom, clamped to 3/4 of physical VMEM.
    w_itemsize = w1.dtype.itemsize
    vmem_need = (
        2 * bm * d_model_p * itemsize                        # x tiles (double-buffered)
        + 2 * 8 * bm * itemsize                              # out tiles (2 sublanes pad to 8)
        + 2 * hidden * d_model_p * w_itemsize                # W1 (2 pipeline buffers, lane-padded)
        + 2 * 3 * _round_up(hidden, 8) * 128 * w_itemsize    # b1, W2, b2 (padded, 2 buffers each)
        + hidden * bm * 4                                    # h^T intermediate (f32)
        + (4 << 20))                                         # headroom
    vmem_limit = int(min(max(vmem_need, 16 << 20), (3 * vmem_cap) // 4))

    flops = 2 * n * d_model * hidden + 2 * n * hidden * out_f
    bytes_accessed = (n * d_model * itemsize + n * out_f * itemsize
                      + (hidden * d_model + hidden + out_f * hidden + out_f) * w_itemsize)

    out_t = pl.pallas_call(
        _mlp_kernel,
        out_shape=jax.ShapeDtypeStruct((out_f, n), x2.dtype),
        grid_spec=pltpu.PrefetchScalarGridSpec(
            num_scalar_prefetch=0,
            grid=grid,
            in_specs=[
                pl.BlockSpec((bm, d_model), lambda i: (i, 0)),      # x rows (streamed)
                pl.BlockSpec((hidden, d_model), lambda i: (0, 0)),  # W1 (resident)
                pl.BlockSpec((hidden, 1), lambda i: (0, 0)),        # b1 (resident)
                pl.BlockSpec((out_f, hidden), lambda i: (0, 0)),    # W2 (resident)
                pl.BlockSpec((out_f, 1), lambda i: (0, 0)),         # b2 (resident)
            ],
            out_specs=pl.BlockSpec((out_f, bm), lambda i: (0, i)),  # lane-dense (2, bm) tile
        ),
        compiler_params=pltpu.CompilerParams(
            dimension_semantics=("parallel",),
            vmem_limit_bytes=vmem_limit,
        ),
        cost_estimate=pl.CostEstimate(
            flops=flops, transcendentals=0, bytes_accessed=bytes_accessed),
    )(x2, w1, b1_col, w2, b2_col)

    # Tiny (2, n) -> (n, 2) transpose in the wrapper keeps the kernel's store path lane-dense.
    return out_t.T.reshape(*orig_shape[:-1], out_f)


def init_decision_decoder_params(key, d_model):
    """Deterministic init mirroring nn.Linear shapes: W1 (32, d_model), b1 (32,), W2 (2, 32), b2 (2,)."""
    k1, k2, k3, k4 = jax.random.split(key, 4)
    hidden, out_f = _HIDDEN, _OUT
    lim1 = 1.0 / jnp.sqrt(d_model)
    lim2 = 1.0 / jnp.sqrt(hidden)
    w1 = jax.random.uniform(k1, (hidden, d_model), jnp.float32, -lim1, lim1)
    b1 = jax.random.uniform(k2, (hidden,), jnp.float32, -lim1, lim1)
    w2 = jax.random.uniform(k3, (out_f, hidden), jnp.float32, -lim2, lim2)
    b2 = jax.random.uniform(k4, (out_f,), jnp.float32, -lim2, lim2)
    return w1, b1, w2, b2


if __name__ == "__main__":
    key = jax.random.PRNGKey(0)
    d_model = 32
    batch, seq = 2, 8

    kx, kp, kr = jax.random.split(key, 3)
    x = jax.random.normal(kx, (batch, seq, d_model), jnp.float32)
    w1, b1, w2, b2 = init_decision_decoder_params(kp, d_model)

    out = decision_decoder_forward(x, w1, b1, w2, b2)
    out = jax.block_until_ready(out)

    ref = jnp.maximum(x @ w1.T + b1, 0.0) @ w2.T + b2
    assert out.shape == (batch, seq, 2), out.shape
    assert jnp.allclose(out, ref, atol=1e-5, rtol=1e-5)

    # Ragged-row-count check (n not a multiple of the block): exercises the padless edge path.
    x_odd = jax.random.normal(kr, (3, 5, d_model), jnp.float32)
    out_odd = jax.block_until_ready(decision_decoder_forward(x_odd, w1, b1, w2, b2))
    ref_odd = jnp.maximum(x_odd @ w1.T + b1, 0.0) @ w2.T + b2
    assert out_odd.shape == (3, 5, 2), out_odd.shape
    assert jnp.allclose(out_odd, ref_odd, atol=1e-5, rtol=1e-5)

    print("KERNEL_OK")
</pallas_src>

<mosaic_0001>
module attributes {stable_mosaic.version = 11 : i64} {
  func.func @_mlp_kernel(%arg0: i32, %arg1: memref<128x32xf32, #tpu.memory_space<vmem>>, %arg2: memref<32x32xf32, #tpu.memory_space<vmem>>, %arg3: memref<32x1xf32, #tpu.memory_space<vmem>>, %arg4: memref<2x32xf32, #tpu.memory_space<vmem>>, %arg5: memref<2x1xf32, #tpu.memory_space<vmem>>, %arg6: memref<2x128xf32, #tpu.memory_space<vmem>>) attributes {dimension_semantics = [#tpu.dimension_semantics<parallel>], iteration_bounds = array<i64: 1>, scalar_prefetch = 0 : i64, scratch_operands = 0 : i64, tpu.core_type = #tpu.core_type<tc>, window_params = [{transform_indices = @transform_0, window_bounds = array<i64: 128, 32>}, {pipeline_mode = #tpu.pipeline_mode<synchronous>, transform_indices = @transform_1, window_bounds = array<i64: 32, 32>}, {pipeline_mode = #tpu.pipeline_mode<synchronous>, transform_indices = @transform_2, window_bounds = array<i64: 32, 1>}, {pipeline_mode = #tpu.pipeline_mode<synchronous>, transform_indices = @transform_3, window_bounds = array<i64: 2, 32>}, {pipeline_mode = #tpu.pipeline_mode<synchronous>, transform_indices = @transform_4, window_bounds = array<i64: 2, 1>}, {transform_indices = @transform_5, window_bounds = array<i64: 2, 128>}]} {
    %c0 = arith.constant 0 : index
    %c0_0 = arith.constant 0 : index
    %0 = vector.load %arg2[%c0, %c0_0] : memref<32x32xf32, #tpu.memory_space<vmem>>, vector<32x32xf32>
    %c0_1 = arith.constant 0 : index
    %c0_2 = arith.constant 0 : index
    %1 = vector.load %arg1[%c0_1, %c0_2] : memref<128x32xf32, #tpu.memory_space<vmem>>, vector<128x32xf32>
    %cst = arith.constant dense<0.000000e+00> : vector<32x128xf32>
    %2 = tpu.matmul %0, %1, %cst {dimension_numbers = #tpu.dot_dimension_numbers<[1], [1], [0], [0], [0, 0, 1, 0], [], []>} : vector<32x32xf32>, vector<128x32xf32>, vector<32x128xf32> -> vector<32x128xf32>
    %c0_3 = arith.constant 0 : index
    %c0_4 = arith.constant 0 : index
    %3 = vector.load %arg3[%c0_3, %c0_4] : memref<32x1xf32, #tpu.memory_space<vmem>>, vector<32x1xf32>
    %4 = vector.broadcast %3 : vector<32x1xf32> to vector<32x128xf32>
    %5 = arith.addf %2, %4 : vector<32x128xf32>
    %cst_5 = arith.constant 0.000000e+00 : f32
    %6 = vector.broadcast %cst_5 : f32 to vector<32x128xf32>
    %7 = arith.maximumf %5, %6 : vector<32x128xf32>
    %c0_6 = arith.constant 0 : index
    %c0_7 = arith.constant 0 : index
    %8 = vector.load %arg4[%c0_6, %c0_7] : memref<2x32xf32, #tpu.memory_space<vmem>>, vector<2x32xf32>
    %cst_8 = arith.constant dense<0.000000e+00> : vector<2x128xf32>
    %9 = tpu.matmul %8, %7, %cst_8 {dimension_numbers = #tpu.dot_dimension_numbers<[1], [0], [0], [1], [0, 0, 1, 1], [], []>} : vector<2x32xf32>, vector<32x128xf32>, vector<2x128xf32> -> vector<2x128xf32>
    %c0_9 = arith.constant 0 : index
    %c0_10 = arith.constant 0 : index
    %10 = vector.load %arg5[%c0_9, %c0_10] : memref<2x1xf32, #tpu.memory_space<vmem>>, vector<2x1xf32>
    %11 = vector.broadcast %10 : vector<2x1xf32> to vector<2x128xf32>
    %12 = arith.addf %9, %11 : vector<2x128xf32>
    %c0_11 = arith.constant 0 : index
    %c0_12 = arith.constant 0 : index
    %13 = vector.load %arg6[%c0_11, %c0_12] : memref<2x128xf32, #tpu.memory_space<vmem>>, vector<2x128xf32>
    tpu.vector_store %arg6[%c0_11, %c0_12], %12 {strides = array<i32>} : memref<2x128xf32, #tpu.memory_space<vmem>>, vector<2x128xf32>,
    return
  }
  func.func @transform_0(%arg0: i32) -> (i32, i32) {
    %c0_i32 = arith.constant 0 : i32
    %c0_i32_0 = arith.constant 0 : i32
    return %arg0, %c0_i32 : i32, i32
  }
  func.func @transform_1(%arg0: i32) -> (i32, i32) {
    %c0_i32 = arith.constant 0 : i32
    %c0_i32_0 = arith.constant 0 : i32
    %c0_i32_1 = arith.constant 0 : i32
    return %c0_i32, %c0_i32_0 : i32, i32
  }
  func.func @transform_2(%arg0: i32) -> (i32, i32) {
    %c0_i32 = arith.constant 0 : i32
    %c0_i32_0 = arith.constant 0 : i32
    %c0_i32_1 = arith.constant 0 : i32
    return %c0_i32, %c0_i32_0 : i32, i32
  }
  func.func @transform_3(%arg0: i32) -> (i32, i32) {
    %c0_i32 = arith.constant 0 : i32
    %c0_i32_0 = arith.constant 0 : i32
    %c0_i32_1 = arith.constant 0 : i32
    return %c0_i32, %c0_i32_0 : i32, i32
  }
  func.func @transform_4(%arg0: i32) -> (i32, i32) {
    %c0_i32 = arith.constant 0 : i32
    %c0_i32_0 = arith.constant 0 : i32
    %c0_i32_1 = arith.constant 0 : i32
    return %c0_i32, %c0_i32_0 : i32, i32
  }
  func.func @transform_5(%arg0: i32) -> (i32, i32) {
    %c0_i32 = arith.constant 0 : i32
    %c0_i32_0 = arith.constant 0 : i32
    return %c0_i32, %arg0 : i32, i32
  }
}

</mosaic_0001>

<bundles_post_ra>
// kernel: tpu_custom_call.1
= control target key start
LH: loop header
LB: loop body
LE: loop exit
PB: predicated region body
PF: predicated region fallthrough
CT: control target
= control target key end

     0   :  { %10 = vsyncpa [#allocation3], 0  ;;  %s667_s0 = inlined_call_operand.hbm [shape: f32[16,32], index: 0, kind: input, shape index: {}]   ;;  %s668_s1 = inlined_call_operand.vmem [shape: f32[32,32], index: 1, kind: input, shape index: {}]   ;;  %s669_s2 = inlined_call_operand.vmem [shape: f32[32,1], index: 2, kind: input, shape index: {}]   ;;  %s670_s3 = inlined_call_operand.vmem [shape: f32[2,32], index: 3, kind: input, shape index: {}]   ;;  %s671_s4 = inlined_call_operand.vmem [shape: f32[2,1], index: 4, kind: input, shape index: {}]   ;;  %s672_s5 = inlined_call_operand.hbm [shape: f32[2,16], index: 5, kind: output, shape index: {}]  }
   0x1   :  { %11 = vsyncpa [#allocation4], 0 }
   0x2   :  { %16 = vsyncadd [#allocation3], 1792  ;;  %s532_s18 = smov [#allocation2]   ;;  %s484_s22 = scalar_lea.hbm %s667_s0, 256 }
   0x3   :  { %s17_s19 = sshll.u32 %s532_s18, 4  ;;  %p485_p0 = scmp.ne.s32.totalorder %s667_s0, %s484_s22  ;;  %s18_s19 = int_to_ptr.vmem [resolvable:$true] %s17_s19 }
   0x4   :  { %p488_p1 = scmp.lt.u32.totalorder %s484_s22, %s667_s0 }
   0x6   :  { %p490_p2 = pnand %p488_p1, %p485_p0 }
   0x8   :  { %493 = shalt.err (!%p490_p2)
}
   0x9   :  { %s494_s27 = scalar_lea.vmem %s18_s19, 256  ;;  %s498_s28 = scalar_lea.vmem %s18_s19, 2048 }
   0xa   :  { %p495_p3 = scmp.ne.s32.totalorder %s18_s19, %s494_s27  ;;  %p499_p4 = scmp.lt.s32.totalorder %s18_s19, %s18_s19 }
   0xb   :  { %p500_p5 = scmp.lt.s32.totalorder %s498_s28, %s494_s27 }
   0xd   :  { %p501_p6 = por %p500_p5, %p499_p4 }
   0xf   :  { %p502_p7 = pnand %p501_p6, %p495_p3 }
  0x11   :  { %505 = shalt.err (!%p502_p7)
}
  0x12   :  { %s533_s29 = smov 128   ;;  %s534_s30 = smov 8  }
  0x13   :  { %23 = dma.hbm_to_vmem [thread:$0]  %s667_s0, 256, %s18_s19, [#allocation3], %s533_s29, %s533_s29, %s534_s30  }
  0x14   :  { %528 = dma.done.wait [#allocation3], 2048  }
  0x15   :  { %529 = vsyncadd [#allocation3], 4294965248  ;;  %v535_v0 = vmov 0   ;;  %vm79_vm0 = vcmask 261120   ;;  %v39_v2 = vld [vmem:[#allocation2] sm:$0xff]  ;;  %v40_v3 = vld [vmem:[#allocation2 + $0x8] sm:$0xff] }
  0x16   :  { %482 = vset.pattern.permute.xlu0 %v535_v0  ;;  %483 = vset.pattern.permute.xlu1 %v535_v0  ;;  %vm584_vm1 = vmpackc.low %vm79_vm0, %vm79_vm0  ;;  %v41_v4 = vld [vmem:[#allocation2 + $0x10] sm:$0xff]  ;;  %v420_v5 = vpack.c.bf16 %v40_v3, %v39_v2  ;;  %v42_v6 = vld [vmem:[#allocation2 + $0x18] sm:$0xff]  ;;  %v536_v35 = vmov 0.0|0.0   ;;  %vm537_vm2 = vmmov 0   ;;  %v538_v36 = vmov 0.0   ;;  %s539_s24 = smov [#allocation5]  }
  0x17   :  { %v426_v7 = vpack.c.bf16 %v42_v6, %v41_v4  ;;  %v35_v8 = vld [vmem:[%s668_s1] sm:$0xff]  ;;  %v44_v10 = vld [vmem:[#allocation2 + $0x28] sm:$0xff]  ;;  %v57_v12 = vld [vmem:[%s669_s2 + $0x10] sm:$0xff]  ;;  %468 = vmatprep.subr.bf16.mxu1 %v536_v35  ;;  %417 = vmatprep.mubr.msk.f32.mxu1 %vm537_vm2, %v538_v36  ;;  %s316_s25 = sshll.u32 %s539_s24, 4  ;;  %s317_s25 = int_to_ptr.vmem [resolvable:$true] %s316_s25 }
  0x18   :  { %422 = vmatprep.subr.msk.bf16.mxu0 %vm584_vm1, %v420_v5  ;;  %v43_v9 = vld [vmem:[#allocation2 + $0x20] sm:$0xff]  ;;  %403 = vmatprep.mubr.msk.f32.mxu0 %vm79_vm0, %v35_v8  ;;  %v56_v13 = vld [vmem:[%s669_s2 + $0x8] sm:$0xff]  ;;  %v58_v15 = vld [vmem:[%s669_s2 + $0x18] sm:$0xff]  ;;  %s506_s26 = scalar_lea.vmem %s317_s25, 32  ;;  %p511_p9 = scmp.lt.s32.totalorder %s317_s25, %s317_s25 }
  0x19   :  { %425 = vmatpush3.bf16.xpose.msk.msra.mxu0 %vm584_vm1, %v420_v5  ;;  %v55_v11 = vld [vmem:[%s669_s2] sm:$0xff]  ;;  %71 = vperm.xlu1 %483, %v57_v12   ;;  %v432_v14 = vpack.c.bf16 %v44_v10, %v43_v9  ;;  %v45_v17 = vld [vmem:[#allocation2 + $0x30] sm:$0xff]  ;;  %v46_v18 = vld [vmem:[#allocation2 + $0x38] sm:$0xff]  ;;  %p507_p8 = scmp.ne.s32.totalorder %s317_s25, %s506_s26  ;;  %p512_p10 = scmp.lt.s32.totalorder %s506_s26, %s506_s26 }
  0x1a   :  { %428 = vmatprep.subr.msk.bf16.mxu0 %vm584_vm1, %v426_v7  ;;  %61 = vperm.xlu0 %482, %v55_v11   ;;  %v230_v16 = vld [vmem:[%s671_s4] sm:$0x3]  ;;  %v438_v19 = vpack.c.bf16 %v46_v18, %v45_v17  ;;  %v48_v21 = vld [vmem:[#allocation2 + $0x48] sm:$0xff]  ;;  %v49_v23 = vld [vmem:[#allocation2 + $0x50] sm:$0xff] }
  0x1b   :  { %v47_v20 = vld [vmem:[#allocation2 + $0x40] sm:$0xff]  ;;  %v50_v24 = vld [vmem:[#allocation2 + $0x58] sm:$0xff]  ;;  %v52_v27 = vld [vmem:[#allocation2 + $0x68] sm:$0xff]  ;;  %p513_p11 = por %p512_p10, %p511_p9 }
  0x1c   :  { %v444_v22 = vpack.c.bf16 %v48_v21, %v47_v20  ;;  %v450_v25 = vpack.c.bf16 %v50_v24, %v49_v23  ;;  %v51_v26 = vld [vmem:[#allocation2 + $0x60] sm:$0xff]  ;;  %v53_v29 = vld [vmem:[#allocation2 + $0x70] sm:$0xff]  ;;  %v54_v30 = vld [vmem:[#allocation2 + $0x78] sm:$0xff] }
  0x1d   :  { %76 = vperm.xlu1 %483, %v58_v15   ;;  %v456_v28 = vpack.c.bf16 %v52_v27, %v51_v26  ;;  %v462_v31 = vpack.c.bf16 %v54_v30, %v53_v29  ;;  %v36_v32 = vld [vmem:[%s668_s1 + $0x8] sm:$0xff]  ;;  %v37_v33 = vld [vmem:[%s668_s1 + $0x10] sm:$0xff]  ;;  %v38_v34 = vld [vmem:[%s668_s1 + $0x18] sm:$0xff]  ;;  %p514_p12 = pnand %p513_p11, %p507_p8 }
  0x1e   :  { %66 = vperm.xlu0 %482, %v56_v13   ;;  %v229_v55 = vld [vmem:[%s670_s3] sm:$0x3] }
  0x21   :  { %431 = vmatpush3.bf16.xpose.msk.msra.mxu0 %vm584_vm1, %v426_v7 }
  0x22   :  { %434 = vmatprep.subr.msk.bf16.mxu0 %vm584_vm1, %v432_v14  ;;  %233 = vperm.xlu0 %482, %v230_v16  }
  0x29   :  { %437 = vmatpush3.bf16.xpose.msk.msra.mxu0 %vm584_vm1, %v432_v14 }
  0x2a   :  { %440 = vmatprep.subr.msk.bf16.mxu0 %vm584_vm1, %v438_v19 }
  0x31   :  { %443 = vmatpush3.bf16.xpose.msk.msra.mxu0 %vm584_vm1, %v438_v19 }
  0x32   :  { %446 = vmatprep.subr.msk.bf16.mxu0 %vm584_vm1, %v444_v22 }
  0x39   :  { %449 = vmatpush3.bf16.xpose.msk.msra.mxu0 %vm584_vm1, %v444_v22 }
  0x3a   :  { %452 = vmatprep.subr.msk.bf16.mxu0 %vm584_vm1, %v450_v25 }
  0x41   :  { %455 = vmatpush3.bf16.xpose.msk.msra.mxu0 %vm584_vm1, %v450_v25 }
  0x42   :  { %458 = vmatprep.subr.msk.bf16.mxu0 %vm584_vm1, %v456_v28 }
  0x49   :  { %461 = vmatpush3.bf16.xpose.msk.msra.mxu0 %vm584_vm1, %v456_v28 }
  0x4a   :  { %464 = vmatprep.subr.msk.bf16.mxu0 %vm584_vm1, %v462_v31 }
  0x51   :  { %467 = vmatpush3.bf16.xpose.msk.msra.mxu0 %vm584_vm1, %v462_v31 }
  0x58   :  { %404 = vmatmul.mubr.msk.f32.vlgmr.msra.gmra.mrb[0].mxu0 %vm79_vm0, %v36_v32 }
  0x59   :  { %406 = vmatprep.mubr.msk.f32.mxu0 %vm79_vm0, %v37_v33 }
  0x5c   :  { %407 = vmatmul.mubr.msk.f32.gmra.mrb[2].mxu0 %vm79_vm0, %v38_v34 }
  0x98   :  { %v72_v38 = vpop.permute.xlu1 %71 }
  0x99   :  { %v62_v37 = vpop.permute.xlu0 %61 }
  0x9c   :  { %v77_v45 = vpop.permute.xlu1 %76 }
  0x9d   :  { %v67_v39 = vpop.permute.xlu0 %66 }
  0xa1   :  { %v234_v56 = vpop.permute.xlu0 %233 }
 0x12b   :  { %v405_v40 = vpop.f32.mrb[0].mxu0 }
 0x12c   :  { %v212_v41 = vadd.f32 %v405_v40, %v67_v39  ;;  %v206_v42 = vpop.f32.mrb[1].mxu0 }
 0x12d   :  { %v207_v43 = vadd.f32 %v206_v42, %v62_v37 }
 0x12e   :  { %v226_v44 = vmax.f32 %v212_v41, 0.0 }
 0x12f   :  { %v225_v46 = vmax.f32 %v207_v43, 0.0  ;;  %v408_v47 = vpop.f32.mrb[2].mxu0 }
 0x130   :  { %v222_v48 = vadd.f32 %v408_v47, %v77_v45  ;;  %v216_v49 = vpop.f32.mrb[3].mxu0 }
 0x131   :  { %v217_v50 = vadd.f32 %v216_v49, %v72_v38  ;;  %v469_v51 = vpack.c.bf16 %v226_v44, %v225_v46 }
 0x132   :  { %v228_v52 = vmax.f32 %v222_v48, 0.0 }
 0x133   :  { %v227_v53 = vmax.f32 %v217_v50, 0.0  ;;  %470 = vmatpush3.bf16.msra.mxu1 %v469_v51 }
 0x134   :  { %471 = vmatprep.subr.bf16.mxu1 %v536_v35 }
 0x135   :  { %v472_v54 = vpack.c.bf16 %v228_v52, %v227_v53 }
 0x137   :  { %473 = vmatpush3.bf16.msra.mxu1 %v472_v54 }
 0x13a   :  { %418 = vmatmul.mubr.msk.f32.vlgmr.msra.gmra.mrb[0].mxu1 %vm79_vm0, %v229_v55 }
 0x20d   :  { %v305_v57 = vpop.f32.mrb[0].mxu1 }
 0x20e   :  { %v306_v58 = vadd.f32 %v305_v57, %v234_v56  ;;  %v419_v59 = vpop.f32.mrb[1].mxu1 }
 0x210   :  { %309 = vst [vmem:[#allocation5] sm:$0x3] %v306_v58 }
 0x211   :  { %517 = shalt.err (!%p514_p12)
}
 0x212   :  { %s518_s3 = scalar_lea.hbm %s672_s5, 32 }
 0x213   :  { %p519_p13 = scmp.ne.s32.totalorder %s672_s5, %s518_s3  ;;  %p522_p0 = scmp.lt.u32.totalorder %s518_s3, %s672_s5 }
 0x215   :  { %p524_p1 = pnand %p522_p0, %p519_p13 }
 0x217   :  { %527 = shalt.err (!%p524_p1)
}
 0x218   :  { %319 = dma.vmem_to_hbm [thread:$0]  %s317_s25, 32, %s672_s5, [#allocation4]  }
 0x219   :  { %530 = dma.done.wait [#allocation4], 32  }
 0x21a   :  { %531 = vsyncadd [#allocation4], 4294967264 }
 0x21b   :  { %323 = vsyncpa [#allocation3], 1 }
 0x21c   :  { %324 = vsyncpa [#allocation4], 1 }

</bundles_post_ra>
